<compile_context>
chip_gen: v6e
topology: v6e:2x2x1
jax: 0.10.0
libtpu: 0.0.40
codegen_flags: <defaults>
</compile_context>

<pallas_src>
import jax
import jax.numpy as jnp
import numpy as np
from jax.experimental import pallas as pl
from jax.experimental.pallas import tpu as pltpu


def self_attention_kernel(x_ref, wqkv_ref, bqkv_ref, wm_ref, bm_ref, o_ref):
    Bt, L, E = x_ref.shape

    # ---- fused Q/K/V projection over all Bt*L tokens in one wide MXU op -------
    # (Bt, L, E) -> (Bt*L, E) is a tile-aligned collapse (minor dim unchanged,
    # second-minor a multiple of 8), i.e. layout-free.
    x2 = x_ref[...].reshape(Bt * L, E)
    qkv = jnp.dot(x2, wqkv_ref[...], preferred_element_type=jnp.float32) + bqkv_ref[...]
    qkv3 = qkv.reshape(Bt, L, 3 * E)
    q = qkv3[:, :, 0:E]            # (Bt, L, E)
    k = qkv3[:, :, E:2 * E]
    v = qkv3[:, :, 2 * E:3 * E]

    # ---- attention, transposed formulation -----------------------------------
    # sT[b, j, i] = k_j . q_i = scores[b, i, j]; softmax over i (PyTorch dim=1)
    # therefore becomes a cheap lane-axis softmax, and no transpose of alpha is
    # needed afterwards.
    sT = jnp.einsum("bje,bie->bji", k, q, preferred_element_type=jnp.float32)
    sT = sT - jnp.max(sT, axis=-1, keepdims=True)
    p = jnp.exp(sT)
    denom = jnp.sum(p, axis=-1, keepdims=True)
    alphaT = p * pl.reciprocal(denom, approx=True)          # EUP, frees VPU slots

    # t[b, j, :] = sum_i alpha[b, i, j] * v[b, i, :] == alphaT @ v
    t = jnp.einsum("bji,bie->bje", alphaT, v, preferred_element_type=jnp.float32)

    # ---- MLP(emb, emb, []) == single Linear, + ReLU, fused over all tokens ----
    pred = jnp.dot(t.reshape(Bt * L, E), wm_ref[...],
                   preferred_element_type=jnp.float32) + bm_ref[...]
    pred = jnp.maximum(pred, 0.0)

    # Single whole-block store (see header comment on the lane-dense tradeoff).
    o_ref[...] = pred.reshape(Bt, L, E)


def _choose_batch_tile(B, max_bt=64):
    """Pick the batch tile Bt (a divisor of B).

    Preference order:
      1. Largest multiple of 8 (sublane-aligned blocks, Bt*L rows feed the MXU
         well) that still leaves >= 2 grid steps for megacore sharding.
      2. The whole batch (block dims == full array dims) for tiny B.
      3. Otherwise the largest divisor keeping >= 2 grid steps.
    """
    best = 0
    for d in range(8, min(B, max_bt) + 1, 8):
        if B % d == 0 and B // d >= 2:
            best = d
    if best:
        return best
    if B <= max_bt:
        return B
    return max(d for d in range(1, max_bt + 1) if B % d == 0 and B // d >= 2)


def self_attention(x, params, *, max_bt=64):
    """x: (B, L, E) float32.  params: (E, E) weights in (in, out) layout, (1, E) biases."""
    B, L, E = x.shape

    # Fuse Q/K/V weights and biases outside the kernel: one (E, 3E) matmul
    # instead of three (E, E) matmuls.
    wqkv = jnp.concatenate([params["wq"], params["wk"], params["wv"]], axis=1)  # (E, 3E)
    bqkv = jnp.concatenate([params["bq"], params["bk"], params["bv"]], axis=1)  # (1, 3E)
    wm, bm = params["wm"], params["bm"]

    Bt = _choose_batch_tile(B, max_bt)
    grid = (B // Bt,)

    return pl.pallas_call(
        self_attention_kernel,
        out_shape=jax.ShapeDtypeStruct((B, L, E), jnp.float32),
        grid_spec=pltpu.PrefetchScalarGridSpec(
            num_scalar_prefetch=0,
            grid=grid,
            in_specs=[
                pl.BlockSpec((Bt, L, E), lambda b: (b, 0, 0)),      # x
                pl.BlockSpec((E, 3 * E), lambda b: (0, 0)),         # fused Wqkv (resident)
                pl.BlockSpec((1, 3 * E), lambda b: (0, 0)),         # fused bqkv
                pl.BlockSpec((E, E), lambda b: (0, 0)),             # Wm
                pl.BlockSpec((1, E), lambda b: (0, 0)),             # bm
            ],
            out_specs=pl.BlockSpec((Bt, L, E), lambda b: (b, 0, 0)),
        ),
        compiler_params=pltpu.CompilerParams(
            dimension_semantics=("parallel",)),
    )(x, wqkv, bqkv, wm, bm)


def init_params(key, emb):
    """Deterministic init mirroring nn.Linear's U(-1/sqrt(in), 1/sqrt(in))."""
    bound = 1.0 / np.sqrt(emb)
    names = ["wq", "bq", "wk", "bk", "wv", "bv", "wm", "bm"]
    keys = jax.random.split(key, len(names))
    params = {}
    for name, k in zip(names, keys):
        if name.startswith("w"):
            # stored as (in, out) so the kernel computes x @ W directly
            params[name] = jax.random.uniform(k, (emb, emb), jnp.float32, -bound, bound)
        else:
            params[name] = jax.random.uniform(k, (1, emb), jnp.float32, -bound, bound)
    return params


def reference(x, params):
    """Pure-JAX reference of the PyTorch forward, for validation."""
    q = x @ params["wq"] + params["bq"]
    k = x @ params["wk"] + params["bk"]
    v = x @ params["wv"] + params["bv"]
    s = jnp.einsum("bie,bje->bij", q, k)                 # bmm(q, k^T)
    alpha = jax.nn.softmax(s, axis=1)                    # softmax over dim=1
    t = jnp.einsum("bie,bij->bje", v, alpha)             # sum_i v[b,i,:] * alpha[b,i,j]
    return jnp.maximum(t @ params["wm"] + params["bm"], 0.0)


if __name__ == "__main__":
    key = jax.random.PRNGKey(0)
    kx, kp, kx2 = jax.random.split(key, 3)

    # Tolerance accommodates the approximate EUP reciprocal in the softmax
    # denominator (relative error ~1e-4) plus fp32 MXU accumulation differences.
    TOL = 5e-3

    # Small canonical shape from the module spec: whole batch in one block.
    B, L, E = 2, 8, 32
    x = jax.random.normal(kx, (B, L, E), jnp.float32)
    params = init_params(kp, E)
    out = jax.block_until_ready(self_attention(x, params))
    np.testing.assert_allclose(np.asarray(out), np.asarray(reference(x, params)),
                               atol=TOL, rtol=TOL)

    # Larger batch exercises the batch-tiled path: Bt=16 -> 2 parallel grid
    # steps, 128-row fused matmuls.
    B2 = 32
    x2 = jax.random.normal(kx2, (B2, L, E), jnp.float32)
    out2 = jax.block_until_ready(self_attention(x2, params))
    np.testing.assert_allclose(np.asarray(out2), np.asarray(reference(x2, params)),
                               atol=TOL, rtol=TOL)

    print("KERNEL_OK")
</pallas_src>

<mosaic_0001>
module attributes {stable_mosaic.version = 11 : i64} {
  func.func @self_attention_kernel(%arg0: i32, %arg1: memref<2x8x32xf32, #tpu.memory_space<vmem>>, %arg2: memref<32x96xf32, #tpu.memory_space<vmem>>, %arg3: memref<1x96xf32, #tpu.memory_space<vmem>>, %arg4: memref<32x32xf32, #tpu.memory_space<vmem>>, %arg5: memref<1x32xf32, #tpu.memory_space<vmem>>, %arg6: memref<2x8x32xf32, #tpu.memory_space<vmem>>) attributes {dimension_semantics = [#tpu.dimension_semantics<parallel>], iteration_bounds = array<i64: 1>, scalar_prefetch = 0 : i64, scratch_operands = 0 : i64, tpu.core_type = #tpu.core_type<tc>, window_params = [{transform_indices = @transform_0, window_bounds = array<i64: 2, 8, 32>}, {pipeline_mode = #tpu.pipeline_mode<synchronous>, transform_indices = @transform_1, window_bounds = array<i64: 32, 96>}, {pipeline_mode = #tpu.pipeline_mode<synchronous>, transform_indices = @transform_2, window_bounds = array<i64: 1, 96>}, {pipeline_mode = #tpu.pipeline_mode<synchronous>, transform_indices = @transform_3, window_bounds = array<i64: 32, 32>}, {pipeline_mode = #tpu.pipeline_mode<synchronous>, transform_indices = @transform_4, window_bounds = array<i64: 1, 32>}, {transform_indices = @transform_5, window_bounds = array<i64: 2, 8, 32>}]} {
    %c0 = arith.constant 0 : index
    %c0_0 = arith.constant 0 : index
    %c0_1 = arith.constant 0 : index
    %0 = vector.load %arg1[%c0, %c0_0, %c0_1] : memref<2x8x32xf32, #tpu.memory_space<vmem>>, vector<2x8x32xf32>
    %1 = vector.shape_cast %0 : vector<2x8x32xf32> to vector<16x32xf32>
    %c0_2 = arith.constant 0 : index
    %c0_3 = arith.constant 0 : index
    %2 = vector.load %arg2[%c0_2, %c0_3] : memref<32x96xf32, #tpu.memory_space<vmem>>, vector<32x96xf32>
    %cst = arith.constant dense<0.000000e+00> : vector<16x96xf32>
    %3 = tpu.matmul %1, %2, %cst {dimension_numbers = #tpu.dot_dimension_numbers<[1], [0], [0], [1], [0, 0, 1, 1], [], []>} : vector<16x32xf32>, vector<32x96xf32>, vector<16x96xf32> -> vector<16x96xf32>
    %c0_4 = arith.constant 0 : index
    %c0_5 = arith.constant 0 : index
    %4 = vector.load %arg3[%c0_4, %c0_5] : memref<1x96xf32, #tpu.memory_space<vmem>>, vector<1x96xf32>
    %5 = vector.broadcast %4 : vector<1x96xf32> to vector<16x96xf32>
    %6 = arith.addf %3, %5 : vector<16x96xf32>
    %7 = vector.shape_cast %6 : vector<16x96xf32> to vector<2x8x96xf32>
    %8 = vector.extract_strided_slice %7 {offsets = [0, 0, 0], sizes = [2, 8, 32], strides = [1, 1, 1]} : vector<2x8x96xf32> to vector<2x8x32xf32>
    %9 = vector.extract_strided_slice %7 {offsets = [0, 0, 32], sizes = [2, 8, 32], strides = [1, 1, 1]} : vector<2x8x96xf32> to vector<2x8x32xf32>
    %10 = vector.extract_strided_slice %7 {offsets = [0, 0, 64], sizes = [2, 8, 32], strides = [1, 1, 1]} : vector<2x8x96xf32> to vector<2x8x32xf32>
    "tpu.trace_start"() <{level = 10 : i32, message = "bje,bie->bji"}> : () -> ()
    %cst_6 = arith.constant dense<0.000000e+00> : vector<2x8x8xf32>
    %11 = tpu.matmul %9, %8, %cst_6 {dimension_numbers = #tpu.dot_dimension_numbers<[2], [2], [1], [1], [0, 0, 0, 1, 1, 1], [0], [0]>} : vector<2x8x32xf32>, vector<2x8x32xf32>, vector<2x8x8xf32> -> vector<2x8x8xf32>
    "tpu.trace_stop"() : () -> ()
    %cst_7 = arith.constant dense<0xFF800000> : vector<2x8xf32>
    %12 = vector.multi_reduction <maximumf>, %11, %cst_7 [2] : vector<2x8x8xf32> to vector<2x8xf32>
    %13 = vector.shape_cast %12 : vector<2x8xf32> to vector<2x8x1xf32>
    %14 = vector.broadcast %13 : vector<2x8x1xf32> to vector<2x8x8xf32>
    %15 = arith.subf %11, %14 : vector<2x8x8xf32>
    %16 = math.exp %15 : vector<2x8x8xf32>
    %cst_8 = arith.constant dense<0.000000e+00> : vector<2x8xf32>
    %17 = vector.multi_reduction <add>, %16, %cst_8 [2] : vector<2x8x8xf32> to vector<2x8xf32>
    %18 = vector.shape_cast %17 : vector<2x8xf32> to vector<2x8x1xf32>
    %19 = tpu.reciprocal %18 {approx = true} : vector<2x8x1xf32> -> vector<2x8x1xf32>
    %20 = vector.broadcast %19 : vector<2x8x1xf32> to vector<2x8x8xf32>
    %21 = arith.mulf %16, %20 : vector<2x8x8xf32>
    "tpu.trace_start"() <{level = 10 : i32, message = "bji,bie->bje"}> : () -> ()
    %cst_9 = arith.constant dense<0.000000e+00> : vector<2x8x32xf32>
    %22 = tpu.matmul %21, %10, %cst_9 {dimension_numbers = #tpu.dot_dimension_numbers<[2], [1], [1], [2], [0, 0, 0, 1, 1, 2], [0], [0]>} : vector<2x8x8xf32>, vector<2x8x32xf32>, vector<2x8x32xf32> -> vector<2x8x32xf32>
    "tpu.trace_stop"() : () -> ()
    %23 = vector.shape_cast %22 : vector<2x8x32xf32> to vector<16x32xf32>
    %c0_10 = arith.constant 0 : index
    %c0_11 = arith.constant 0 : index
    %24 = vector.load %arg4[%c0_10, %c0_11] : memref<32x32xf32, #tpu.memory_space<vmem>>, vector<32x32xf32>
    %cst_12 = arith.constant dense<0.000000e+00> : vector<16x32xf32>
    %25 = tpu.matmul %23, %24, %cst_12 {dimension_numbers = #tpu.dot_dimension_numbers<[1], [0], [0], [1], [0, 0, 1, 1], [], []>} : vector<16x32xf32>, vector<32x32xf32>, vector<16x32xf32> -> vector<16x32xf32>
    %c0_13 = arith.constant 0 : index
    %c0_14 = arith.constant 0 : index
    %26 = vector.load %arg5[%c0_13, %c0_14] : memref<1x32xf32, #tpu.memory_space<vmem>>, vector<1x32xf32>
    %27 = vector.broadcast %26 : vector<1x32xf32> to vector<16x32xf32>
    %28 = arith.addf %25, %27 : vector<16x32xf32>
    %cst_15 = arith.constant 0.000000e+00 : f32
    %29 = vector.broadcast %cst_15 : f32 to vector<16x32xf32>
    %30 = arith.maximumf %28, %29 : vector<16x32xf32>
    %31 = vector.shape_cast %30 : vector<16x32xf32> to vector<2x8x32xf32>
    %c0_16 = arith.constant 0 : index
    %c0_17 = arith.constant 0 : index
    %c0_18 = arith.constant 0 : index
    %32 = vector.load %arg6[%c0_16, %c0_17, %c0_18] : memref<2x8x32xf32, #tpu.memory_space<vmem>>, vector<2x8x32xf32>
    tpu.vector_store %arg6[%c0_16, %c0_17, %c0_18], %31 {strides = array<i32>} : memref<2x8x32xf32, #tpu.memory_space<vmem>>, vector<2x8x32xf32>,
    return
  }
  func.func @transform_0(%arg0: i32) -> (i32, i32, i32) {
    %c0_i32 = arith.constant 0 : i32
    %c0_i32_0 = arith.constant 0 : i32
    %c0_i32_1 = arith.constant 0 : i32
    return %arg0, %c0_i32, %c0_i32_0 : i32, i32, i32
  }
  func.func @transform_1(%arg0: i32) -> (i32, i32) {
    %c0_i32 = arith.constant 0 : i32
    %c0_i32_0 = arith.constant 0 : i32
    %c0_i32_1 = arith.constant 0 : i32
    return %c0_i32, %c0_i32_0 : i32, i32
  }
  func.func @transform_2(%arg0: i32) -> (i32, i32) {
    %c0_i32 = arith.constant 0 : i32
    %c0_i32_0 = arith.constant 0 : i32
    %c0_i32_1 = arith.constant 0 : i32
    return %c0_i32, %c0_i32_0 : i32, i32
  }
  func.func @transform_3(%arg0: i32) -> (i32, i32) {
    %c0_i32 = arith.constant 0 : i32
    %c0_i32_0 = arith.constant 0 : i32
    %c0_i32_1 = arith.constant 0 : i32
    return %c0_i32, %c0_i32_0 : i32, i32
  }
  func.func @transform_4(%arg0: i32) -> (i32, i32) {
    %c0_i32 = arith.constant 0 : i32
    %c0_i32_0 = arith.constant 0 : i32
    %c0_i32_1 = arith.constant 0 : i32
    return %c0_i32, %c0_i32_0 : i32, i32
  }
  func.func @transform_5(%arg0: i32) -> (i32, i32, i32) {
    %c0_i32 = arith.constant 0 : i32
    %c0_i32_0 = arith.constant 0 : i32
    %c0_i32_1 = arith.constant 0 : i32
    return %arg0, %c0_i32, %c0_i32_0 : i32, i32, i32
  }
}

</mosaic_0001>

<bundles_post_ra>
// kernel: tpu_custom_call.1
= control target key start
LH: loop header
LB: loop body
LE: loop exit
PB: predicated region body
PF: predicated region fallthrough
CT: control target
= control target key end

     0   :  { %10 = vsyncpa [#allocation3], 0  ;;  %s876_s0 = inlined_call_operand.hbm [shape: f32[2,8,32], index: 0, kind: input, shape index: {}]   ;;  %s877_s1 = inlined_call_operand.hbm [shape: f32[32,96], index: 1, kind: input, shape index: {}]   ;;  %s878_s2 = inlined_call_operand.vmem [shape: f32[1,96], index: 2, kind: input, shape index: {}]   ;;  %s879_s3 = inlined_call_operand.hbm [shape: f32[32,32], index: 3, kind: input, shape index: {}]   ;;  %s880_s4 = inlined_call_operand.vmem [shape: f32[1,32], index: 4, kind: input, shape index: {}]   ;;  %s881_s5 = inlined_call_operand.hbm [shape: f32[2,8,32], index: 5, kind: output, shape index: {}]  }
   0x1   :  { %11 = vsyncpa [#allocation6], 0 }
   0x2   :  { %12 = vsyncpa [#allocation4], 0  ;;  %s778_s18 = smov [#allocation5]   ;;  %s779_s20 = smov [#allocation2]  }
   0x3   :  { %s30_s19 = sshll.u32 %s778_s18, 4  ;;  %s18_s21 = sshll.u32 %s779_s20, 4  ;;  %s31_s19 = int_to_ptr.vmem [resolvable:$true] %s30_s19  ;;  %s19_s21 = int_to_ptr.vmem [resolvable:$true] %s18_s21 }
   0x4   :  { %s700_s22 = scalar_lea.vmem %s31_s19, 512  ;;  %p705_p1 = scmp.lt.s32.totalorder %s31_s19, %s31_s19 }
   0x5   :  { %p701_p0 = scmp.ne.s32.totalorder %s31_s19, %s700_s22  ;;  %p706_p2 = scmp.lt.s32.totalorder %s700_s22, %s700_s22 }
   0x7   :  { %p707_p3 = por %p706_p2, %p705_p1 }
   0x9   :  { %p708_p4 = pnand %p707_p3, %p701_p0 }
   0xb   :  { %711 = shalt.err (!%p708_p4)
}
   0xc   :  { %s780_s23 = smov 128   ;;  %s781_s24 = smov 8  }
   0xd   :  { %36 = dma.hbm_to_vmem [thread:$0]  %s877_s1, 512, %s31_s19, [#allocation6], %s780_s23, %s780_s23, %s781_s24  }
   0xe   :  { %s720_s27 = scalar_lea.vmem %s19_s21, 256  ;;  %p725_p6 = scmp.lt.s32.totalorder %s19_s21, %s19_s21 }
   0xf   :  { %p721_p5 = scmp.ne.s32.totalorder %s19_s21, %s720_s27  ;;  %p726_p7 = scmp.lt.s32.totalorder %s720_s27, %s720_s27 }
  0x11   :  { %p727_p8 = por %p726_p7, %p725_p6 }
  0x13   :  { %p728_p9 = pnand %p727_p8, %p721_p5 }
  0x15   :  { %731 = shalt.err (!%p728_p9)
}
  0x16   :  { %24 = dma.hbm_to_vmem [thread:$0]  %s876_s0, 256, %s19_s21, [#allocation3], %s780_s23, %s780_s23, %s781_s24  }
  0x17   :  { %s782_s30 = smov [#allocation7]  }
  0x18   :  { %s44_s6 = sshll.u32 %s782_s30, 4  ;;  %s45_s6 = int_to_ptr.vmem [resolvable:$true] %s44_s6 }
  0x19   :  { %s740_s7 = scalar_lea.vmem %s45_s6, 512  ;;  %p745_p11 = scmp.lt.s32.totalorder %s45_s6, %s45_s6 }
  0x1a   :  { %p741_p10 = scmp.ne.s32.totalorder %s45_s6, %s740_s7  ;;  %p746_p12 = scmp.lt.s32.totalorder %s740_s7, %s740_s7 }
  0x1c   :  { %p747_p13 = por %p746_p12, %p745_p11 }
  0x1e   :  { %p748_p0 = pnand %p747_p13, %p741_p10 }
  0x20   :  { %751 = shalt.err (!%p748_p0)
}
  0x21   :  { %50 = dma.hbm_to_vmem [thread:$0]  %s879_s3, 512, %s45_s6, [#allocation6], %s780_s23, %s780_s23, %s781_s24  }
  0x22   :  { %772 = dma.done.wait [#allocation3], 256  }
  0x23   :  { %773 = vsyncadd [#allocation3], 4294967040 }
  0x24   :  { %774 = dma.done.wait [#allocation6], 1024  }
  0x25   :  { %775 = vsyncadd [#allocation6], 4294966272  ;;  %vm75_vm0 = vcmask 261120   ;;  %v67_v0 = vld [vmem:[#allocation5 + $0x18] sm:$0xff]  ;;  %v66_v1 = vld [vmem:[#allocation5 + $0x10] sm:$0xff]  ;;  %v783_v6 = vmov 0.0  }
  0x26   :  { %632 = vmatprep.subr.mxu0 %v67_v0  ;;  %v62_v2 = vld [vmem:[#allocation2] sm:$0xff]  ;;  %v65_v3 = vld [vmem:[#allocation5 + $0x8] sm:$0xff]  ;;  %v64_v4 = vld [vmem:[#allocation5] sm:$0xff]  ;;  %643 = vmatprep.subr.mxu1 %v783_v6  ;;  %vm784_vm1 = vmmov 0   ;;  %s785_s9 = smov 96   ;;  %vm311_vm2 = vcmask 64512  }
  0x27   :  { %633 = vmatpush3.msra.mxu0 %v67_v0  ;;  %640 = vmatprep.mubr.msk.f32.mxu0 %vm75_vm0, %v62_v2  ;;  %v63_v5 = vld [vmem:[#allocation2 + $0x8] sm:$0xff]  ;;  %v600_v8 = vld [vmem:[%s878_s2] ss:$0 sm:$0xff]  ;;  %s786_s2 = smov 64   ;;  %v487_v40 = vld [vmem:[#allocation7 + $0x8] sm:$0xff]  ;;  %s787_s12 = smov [#allocation8]  }
  0x28   :  { %634 = vmatprep.subr.mxu0 %v66_v1  ;;  %645 = vmatprep.mubr.msk.f32.mxu1 %vm784_vm1, %v783_v6  ;;  %v489_v31 = vld [vmem:[#allocation7 + $0x18] sm:$0xff]  ;;  %v488_v32 = vld [vmem:[#allocation7 + $0x10] sm:$0xff]  ;;  %v486_v41 = vld [vmem:[#allocation7] sm:$0xff]  ;;  %s587_s13 = sshll.u32 %s787_s12, 4  ;;  %s588_s13 = int_to_ptr.vmem [resolvable:$true] %s587_s13 }
  0x29   :  { %635 = vmatpush3.msra.mxu0 %v66_v1  ;;  %v609_v46 = vld [vmem:[%s880_s4] ss:$0 sm:$0xff]  ;;  %s752_s14 = scalar_lea.vmem %s588_s13, 256  ;;  %p757_p2 = scmp.lt.s32.totalorder %s588_s13, %s588_s13 }
  0x2a   :  { %636 = vmatprep.subr.mxu0 %v65_v3  ;;  %p753_p1 = scmp.ne.s32.totalorder %s588_s13, %s752_s14  ;;  %p758_p3 = scmp.lt.s32.totalorder %s752_s14, %s752_s14 }
  0x2b   :  { %637 = vmatpush3.msra.mxu0 %v65_v3 }
  0x2c   :  { %638 = vmatprep.subr.mxu0 %v64_v4  ;;  %p759_p4 = por %p758_p3, %p757_p2 }
  0x2d   :  { %639 = vmatpush3.msra.mxu0 %v64_v4 }
  0x2e   :  { %641 = vmatmul.mubr.msk.f32.vlgmr.msra.gmra.mxu0 %vm75_vm0, %v63_v5  ;;  %663 = vmatprep.subr.mxu0 %v489_v31  ;;  %p760_p5 = pnand %p759_p4, %p753_p1 }
  0x2f   :  { %664 = vmatpush3.msra.mxu0 %v489_v31 }
  0x30   :  { %665 = vmatprep.subr.mxu0 %v488_v32 }
  0x31   :  { %666 = vmatpush3.msra.mxu0 %v488_v32 }
  0x32   :  { %667 = vmatprep.subr.mxu0 %v487_v40 }
  0x33   :  { %668 = vmatpush3.msra.mxu0 %v487_v40 }
  0x34   :  { %669 = vmatprep.subr.mxu0 %v486_v41 }
  0x35   :  { %670 = vmatpush3.msra.mxu0 %v486_v41 }
  0xee   :  { %v642_v7 = vpop.f32.mrf.mxu0 }
  0xef   :  { %v154_v11 = vadd.f32 %v642_v7, %v600_v8 }
  0xf0   :  { %v148_v9 = vpop.f32.mrf.mxu0 }
  0xf1   :  { %v149_v10 = vadd.f32 %v600_v8, %v148_v9 }
  0xf3   :  { %158 = vrot.lane.b32.xlu0 %v149_v10, %s785_s9  ;;  %644 = vmatpush3.xpose.msk.msra.mxu1 %vm75_vm0, %v149_v10 }
  0xf4   :  { %648 = vmatprep.subr.mxu1 %v783_v6 }
  0xf7   :  { %235 = vrot.lane.b32.xlu0 %v154_v11, %s785_s9 }
 0x165   :  { %v159_v12 = vpop.permute.xlu0 %158 }
 0x166   :  { %646 = vmatmul.mubr.msk.f32.vlgmr.msra.gmra.mxu1 %vm75_vm0, %v159_v12 }
 0x167   :  { %649 = vmatpush3.xpose.msk.msra.mxu1 %vm75_vm0, %v154_v11  ;;  %650 = vmatprep.mubr.msk.f32.mxu1 %vm784_vm1, %v783_v6 }
 0x168   :  { %653 = vmatprep.subr.mxu1 %v783_v6 }
 0x169   :  { %v236_v13 = vpop.permute.xlu0 %235 }
 0x16a   :  { %651 = vmatmul.mubr.msk.f32.vlgmr.msra.gmra.mxu1 %vm75_vm0, %v236_v13 }
 0x16b   :  { %655 = vmatprep.mubr.msk.f32.mxu1 %vm784_vm1, %v783_v6 }
 0x226   :  { %v230_v14 = vpop.f32.mrf.mxu1 }
 0x227   :  { %v312_v15 = vsel %vm311_vm2, %v230_v14, -inf }
 0x228   :  { %313 = vmax.xlane.f32.xlu1 %v312_v15  ;;  %v647_v16 = vpop.f32.mrf.mxu1 }
 0x22a   :  { %v307_v17 = vpop.f32.mrf.mxu1 }
 0x22b   :  { %v315_v18 = vsel %vm311_vm2, %v307_v17, -inf }
 0x22c   :  { %316 = vmax.xlane.f32.xlu1 %v315_v18  ;;  %v652_v19 = vpop.f32.mrf.mxu1 }
 0x23d   :  { %334 = vrot.lane.b32.xlu1 %v149_v10, %s786_s2 }
 0x2b1   :  { %v314_v20 = vpop.xlane.xlu1 %313 }
 0x2b2   :  { %v318_v21 = vsub.f32 %v230_v14, %v314_v20 }
 0x2b4   :  { %v320_v22 = vmul.f32 1.442695, %v318_v21 }
 0x2b5   :  { %v317_v23 = vpop.xlane.xlu1 %316 }
 0x2b6   :  { %684 = vpow2.f32 %v320_v22  ;;  %v319_v24 = vsub.f32 %v307_v17, %v317_v23 }
 0x2b8   :  { %v322_v25 = vmul.f32 1.442695, %v319_v24 }
 0x2b9   :  { %v335_v26 = vpop.permute.xlu1 %334 }
 0x2ba   :  { %686 = vpow2.f32 %v322_v25  ;;  %654 = vmatpush3.msra.mxu1 %v335_v26 }
 0x2bb   :  { %658 = vmatprep.subr.mxu1 %v783_v6 }
 0x2c3   :  { %v685_v27 = vpop.eup %684 }
 0x2c4   :  { %v324_v28 = vsel %vm311_vm2, %v685_v27, 0.0 }
 0x2c5   :  { %325 = vadd.xlane.f32.xlu0 %v324_v28 }
 0x2c7   :  { %v687_v29 = vpop.eup %686 }
 0x2c8   :  { %v327_v30 = vsel %vm311_vm2, %v687_v29, 0.0 }
 0x2c9   :  { %328 = vadd.xlane.f32.xlu1 %v327_v30 }
 0x2da   :  { %410 = vrot.lane.b32.xlu1 %v154_v11, %s786_s2 }
 0x34e   :  { %v326_v33 = vpop.xlane.xlu0 %325 }
 0x34f   :  { %688 = vrcp.f32 %v326_v33 }
 0x352   :  { %v329_v34 = vpop.xlane.xlu1 %328 }
 0x353   :  { %690 = vrcp.f32 %v329_v34 }
 0x356   :  { %v411_v37 = vpop.permute.xlu1 %410 }
 0x35c   :  { %v689_v35 = vpop.eup %688 }
 0x35d   :  { %v332_v36 = vmul.f32 %v689_v35, %v685_v27 }
 0x35f   :  { %656 = vmatmul.mubr.msk.f32.vlgmr.msra.gmra.mxu1 %vm311_vm2, %v332_v36 }
 0x360   :  { %v691_v38 = vpop.eup %690  ;;  %659 = vmatpush3.msra.mxu1 %v411_v37  ;;  %660 = vmatprep.mubr.msk.f32.mxu1 %vm784_vm1, %v783_v6 }
 0x361   :  { %v333_v39 = vmul.f32 %v691_v38, %v687_v29 }
 0x363   :  { %661 = vmatmul.mubr.msk.f32.vlgmr.msra.gmra.mxu1 %vm311_vm2, %v333_v39 }
 0x41f   :  { %v406_v42 = vpop.f32.mrf.mxu1 }
 0x420   :  { %671 = vmatprep.mubr.msk.f32.mxu0 %vm75_vm0, %v406_v42 }
 0x421   :  { %v657_v43 = vpop.f32.mrf.mxu1 }
 0x423   :  { %v482_v44 = vpop.f32.mrf.mxu1 }
 0x424   :  { %672 = vmatmul.mubr.msk.f32.vlgmr.msra.gmra.mxu0 %vm75_vm0, %v482_v44 }
 0x425   :  { %v662_v45 = vpop.f32.mrf.mxu1 }
 0x4e4   :  { %v673_v47 = vpop.f32.mrf.mxu0 }
 0x4e5   :  { %v575_v48 = vadd.f32 %v673_v47, %v609_v46 }
 0x4e6   :  { %v569_v49 = vpop.f32.mrf.mxu0 }
 0x4e7   :  { %v579_v50 = vmax.f32 %v575_v48, 0.0  ;;  %v570_v51 = vadd.f32 %v609_v46, %v569_v49 }
 0x4e9   :  { %581 = vst.msk [vmem:[#allocation8 + $0x8] sm:$0xff] %vm75_vm0, %v579_v50  ;;  %v578_v52 = vmax.f32 %v570_v51, 0.0 }
 0x4eb   :  { %580 = vst.msk [vmem:[#allocation8] sm:$0xff] %vm75_vm0, %v578_v52 }
 0x4ec   :  { %763 = shalt.err (!%p760_p5)
}
 0x4ed   :  { %593 = dma.vmem_to_hbm [thread:$0]  %s588_s13, 256, %s881_s5, [#allocation4], %s780_s23, %s780_s23, %s781_s24  }
 0x4ee   :  { %776 = dma.done.wait [#allocation4], 256  }
 0x4ef   :  { %777 = vsyncadd [#allocation4], 4294967040 }
 0x4f0   :  { %597 = vsyncpa [#allocation3], 1 }
 0x4f1   :  { %598 = vsyncpa [#allocation6], 1 }
 0x4f2   :  { %599 = vsyncpa [#allocation4], 1 }

</bundles_post_ra>
